<compile_context>
chip_gen: v7x
topology: tpu7x:2x2x1
jax: 0.10.0
libtpu: 0.0.40
codegen_flags: <defaults>
</compile_context>

<pallas_src>
import numpy as np
import jax
import jax.numpy as jnp
from jax import lax
from jax.experimental import pallas as pl
from jax.experimental.pallas import tpu as pltpu

# ---------------- model dimensions (small, synthetic) ----------------
D = 32             # encoder hidden dim
V = 50             # vocab size including <mask>
V_PAD = 128        # lane-dense padded vocab
T = 16             # number of encoder frames
L_MAX = T          # collapsed CTC sequence length is always <= T
MASK_TOKEN = V - 1
N_ITERATIONS = 2
THRESHOLD_PROBABILITY = 0.9
NEG_INF = -1.0e30

# weight-slab row layout (single contiguous bf16 buffer)
_SLAB_EMQ = 0            # rows [0, V_PAD):        [embed | embed @ (wq/sqrt(D)) | 0]
_SLAB_KV = V_PAD         # rows [V_PAD, V_PAD+D):  [wk | wv | 0]
_SLAB_WO = V_PAD + D     # rows [V_PAD+D, +2D):    wo padded to V_PAD lanes
_SLAB_ROWS = V_PAD + 2 * D


def _vmem():
    return pl.BlockSpec(memory_space=pltpu.MemorySpace.VMEM)


def _smem():
    return pl.BlockSpec(memory_space=pltpu.MemorySpace.SMEM)


# ---------------- kernel 1: CTC head (linear + softmax-max + argmax) ----------------
def _ctc_kernel(enc_ref, w_ref, b_ref, prob_ref, id_ref):
    logits = jnp.dot(enc_ref[...], w_ref[...],
                     preferred_element_type=jnp.float32) + b_ref[...]       # (T, V_PAD)
    mx = jnp.max(logits, axis=-1, keepdims=True)                            # (T, 1)
    sumexp = jnp.sum(jnp.exp(logits - mx), axis=-1, keepdims=True)          # (T, 1)
    prob = 1.0 / sumexp        # exact divide: threshold comparison is sensitive
    col = lax.broadcasted_iota(jnp.int32, logits.shape, 1)
    ids = jnp.min(jnp.where(logits == mx, col, logits.shape[-1]),
                  axis=-1, keepdims=True)                                   # first argmax
    # lane-dense stores: broadcast the (T,1) columns across all 128 lanes
    prob_ref[...] = jnp.broadcast_to(prob, prob_ref.shape)
    id_ref[...] = jnp.broadcast_to(ids, id_ref.shape)


# ---------------- kernel 2: full iterative MLM refinement (single pallas_call) ----------------
def _refine_kernel(scal_ref, state_ref, enc_ref, slab_ref, bo_ref, out_ref):
    Lm = state_ref.shape[0]
    num_iter = scal_ref[0]                       # SMEM scalar
    k_top_f = scal_ref[1].astype(jnp.float32)    # SMEM scalar

    st = state_ref[...]                          # (Lm, 3) int32: [y0, masked0, valid]
    y0 = st[:, 0:1]
    masked0 = st[:, 1:2]
    valid = st[:, 2:3] != 0

    enc = enc_ref[...]                                           # (T, D) bf16
    emq_tab = slab_ref[_SLAB_EMQ:_SLAB_EMQ + V_PAD, :]           # (V_PAD, 128) bf16
    kv_tab = slab_ref[_SLAB_KV:_SLAB_KV + D, :]                  # (D, 128) bf16
    wo_tab = slab_ref[_SLAB_WO:_SLAB_WO + D, :]                  # (D, 128) bf16
    bo = bo_ref[...]                                             # (1, 128) f32

    # loop-invariant K / V: single MXU push on stacked [wk | wv]
    kv = jnp.dot(enc, kv_tab, preferred_element_type=jnp.float32)   # (T, 128) f32
    k_bf = kv[:, 0:D].astype(jnp.bfloat16)                           # (T, D)
    v_bf = kv[:, D:2 * D].astype(jnp.bfloat16)                       # (T, D)

    col_v = lax.broadcasted_iota(jnp.int32, (Lm, V_PAD), 1)
    row_i = lax.broadcasted_iota(jnp.int32, (Lm, Lm), 0)
    col_i = lax.broadcasted_iota(jnp.int32, (Lm, Lm), 1)
    eye = row_i == col_i

    def mlm_step(y):
        # fused embedding gather + Q projection: one-hot @ [embed | embed@wq_scaled]
        onehot = jnp.where(col_v == y, 1.0, 0.0).astype(jnp.bfloat16)          # (Lm, V_PAD)
        emq = jnp.dot(onehot, emq_tab, preferred_element_type=jnp.float32)     # (Lm, 128)
        emb = emq[:, 0:D]                                                      # (Lm, D) f32
        q_bf = emq[:, D:2 * D].astype(jnp.bfloat16)                            # scale folded
        scores = lax.dot_general(q_bf, k_bf, (((1,), (1,)), ((), ())),
                                 preferred_element_type=jnp.float32)           # (Lm, T)
        m = jnp.max(scores, axis=-1, keepdims=True)
        p = jnp.exp(scores - m)
        p = p * pl.reciprocal(jnp.sum(p, axis=-1, keepdims=True), approx=True)
        ctx = jnp.dot(p.astype(jnp.bfloat16), v_bf,
                      preferred_element_type=jnp.float32)                      # (Lm, D)
        h = (ctx + emb).astype(jnp.bfloat16)                                   # residual
        logits = jnp.dot(h, wo_tab, preferred_element_type=jnp.float32) + bo   # (Lm, 128)
        mx = jnp.max(logits, axis=-1, keepdims=True)                           # (Lm, 1)
        ids = jnp.min(jnp.where(logits == mx, col_v, V_PAD),
                      axis=-1, keepdims=True)                                  # first argmax
        return ids, mx

    def body(_, carry):
        y, masked_i = carry
        masked = masked_i != 0
        pred_id, score = mlm_step(y)
        s = jnp.where(masked, score, NEG_INF)                          # (Lm, 1)
        # transpose-free row view of s: select the diagonal then sublane-reduce
        s_row = jnp.sum(jnp.where(eye, jnp.broadcast_to(s, (Lm, Lm)), 0.0),
                        axis=0, keepdims=True)                         # (1, Lm)
        # rank-based top-k with first-index tie-break (matches torch.topk)
        better = (s_row > s) | ((s_row == s) & (col_i < row_i))        # (Lm, Lm)
        rank = jnp.sum(better.astype(jnp.float32), axis=1, keepdims=True)
        take = masked & (rank < k_top_f)
        y_new = jnp.where(take, pred_id, y)
        masked_new = (y_new == MASK_TOKEN) & valid
        return y_new, masked_new.astype(jnp.int32)

    y, masked_i = lax.fori_loop(0, num_iter - 1, body, (y0, masked0))
    pred_id, _ = mlm_step(y)                                           # final fill
    y_final = jnp.where(masked_i != 0, pred_id, y)                     # (Lm, 1) int32
    out_ref[...] = jnp.broadcast_to(y_final, out_ref.shape)            # lane-dense store


# ---------------- whole forward on device: ONE jit, one final D2H transfer ----------------
@jax.jit
def _device_forward(enc, prep, n_iter, p_thres):
    t = enc.shape[0]
    enc_b = enc.astype(jnp.bfloat16)

    prob_plane, id_plane = pl.pallas_call(
        _ctc_kernel,
        out_shape=(jax.ShapeDtypeStruct((t, V_PAD), jnp.float32),
                   jax.ShapeDtypeStruct((t, V_PAD), jnp.int32)),
        in_specs=[_vmem(), _vmem(), _vmem()],
        out_specs=(_vmem(), _vmem()),
    )(enc_b, prep["w_ctc"], prep["b_ctc"])
    ctc_probs = prob_plane[:, 0]                     # (T,)
    ctc_ids = id_plane[:, 0]                         # (T,) int32

    # ---- on-device CTC collapse (itertools.groupby + per-group max prob) ----
    gar = jnp.arange(t, dtype=jnp.int32)
    change = jnp.concatenate([jnp.ones((1,), jnp.bool_), ctc_ids[1:] != ctc_ids[:-1]])
    group = jnp.cumsum(change.astype(jnp.int32)) - 1            # group index per frame
    n_groups = group[-1] + 1
    member = group[:, None] == gar[None, :]                     # (frame, group)
    g_id = jnp.max(jnp.where(member, ctc_ids[:, None], -1), axis=0)        # (T,)
    g_prob = jnp.max(jnp.where(member, ctc_probs[:, None], -1.0), axis=0)  # (T,)
    nonblank = (g_id != 0) & (gar < n_groups)
    pos = jnp.cumsum(nonblank.astype(jnp.int32)) - 1            # compacted slot per group
    L = jnp.sum(nonblank.astype(jnp.int32))
    sel = nonblank[:, None] & (pos[:, None] == gar[None, :])    # (group, slot)
    y_hat = jnp.sum(jnp.where(sel, g_id[:, None], 0), axis=0)   # (T,) compacted ids
    p_hat = jnp.sum(jnp.where(sel, g_prob[:, None], 0.0), axis=0)

    valid = gar < L
    masked0 = valid & (p_hat < p_thres)
    y0 = jnp.where(masked0, MASK_TOKEN, jnp.where(valid, y_hat, 0)).astype(jnp.int32)

    mask_num = jnp.sum(masked0.astype(jnp.int32))
    num_iter = jnp.where((mask_num >= n_iter) & (n_iter > 0), n_iter, mask_num)
    num_iter = jnp.maximum(num_iter, 1)                         # mask_num == 0 -> no-op loop
    k_top = mask_num // num_iter

    scal = jnp.stack([num_iter, k_top]).astype(jnp.int32)                     # (2,) SMEM
    state = jnp.stack([y0, masked0.astype(jnp.int32),
                       valid.astype(jnp.int32)], axis=1)                      # (L_MAX, 3)

    y_plane = pl.pallas_call(
        _refine_kernel,
        out_shape=jax.ShapeDtypeStruct((L_MAX, V_PAD), jnp.int32),
        in_specs=[_smem(), _vmem(), _vmem(), _vmem(), _vmem()],
        out_specs=_vmem(),
    )(scal, state, enc_b, prep["slab"], prep["bo"])
    return y_plane[:, 0], L


# ---------------- parameter preparation (pad vocab, fold scale, stack & pack, bf16) ----------------
def prepare_params(params):
    f32 = jnp.float32
    scale = np.float32(1.0 / np.sqrt(float(D)))
    embed = params["embed"].astype(f32)                              # (V, D)
    emb_q = embed @ (params["wq"].astype(f32) * scale)               # fold attention scale

    emq_tab = jnp.zeros((V_PAD, V_PAD), f32)
    emq_tab = emq_tab.at[:V, :D].set(embed).at[:V, D:2 * D].set(emb_q)
    kv_tab = jnp.zeros((D, V_PAD), f32)
    kv_tab = kv_tab.at[:, :D].set(params["wk"]).at[:, D:2 * D].set(params["wv"])
    wo_tab = jnp.zeros((D, V_PAD), f32).at[:, :V].set(params["wo"])
    slab = jnp.concatenate([emq_tab, kv_tab, wo_tab], axis=0).astype(jnp.bfloat16)

    bo = jnp.full((1, V_PAD), NEG_INF, f32).at[0, :V].set(params["bo"])
    w_ctc = jnp.zeros((D, V_PAD), f32).at[:, :V].set(params["w_ctc"]).astype(jnp.bfloat16)
    b_ctc = jnp.full((1, V_PAD), NEG_INF, f32).at[0, :V].set(params["b_ctc"])
    return {"w_ctc": w_ctc, "b_ctc": b_ctc, "slab": slab, "bo": bo}


# ---------------- MaskCTCInference.forward ----------------
def mask_ctc_inference(enc_out, params,
                       n_iterations=N_ITERATIONS,
                       threshold_probability=THRESHOLD_PROBABILITY):
    prep = prepare_params(params)
    y_full, L = _device_forward(enc_out, prep,
                                jnp.asarray(n_iterations, jnp.int32),
                                jnp.asarray(threshold_probability, jnp.float32))
    y_np, L_np = jax.device_get(jax.block_until_ready((y_full, L)))
    Li = int(L_np)   # data-dependent final length -> trimmed on host
    yseq = np.concatenate([np.array([MASK_TOKEN], np.int64),
                           np.asarray(y_np[:Li], np.int64),
                           np.array([MASK_TOKEN], np.int64)])
    return yseq


# ---------------- deterministic parameter init ----------------
def init_params(key):
    ks = jax.random.split(key, 8)
    s = 0.1
    return {
        "w_ctc": jax.random.normal(ks[0], (D, V), jnp.float32) * s,
        "b_ctc": jax.random.normal(ks[1], (V,), jnp.float32) * s,
        "embed": jax.random.normal(ks[2], (V, D), jnp.float32) * s,
        "wq":    jax.random.normal(ks[3], (D, D), jnp.float32) * s,
        "wk":    jax.random.normal(ks[4], (D, D), jnp.float32) * s,
        "wv":    jax.random.normal(ks[5], (D, D), jnp.float32) * s,
        "wo":    jax.random.normal(ks[6], (D, V), jnp.float32) * s,
        "bo":    jax.random.normal(ks[7], (V,), jnp.float32) * s,
    }


if __name__ == "__main__":
    key = jax.random.PRNGKey(0)
    k_enc, k_par = jax.random.split(key)
    enc_out = jax.random.normal(k_enc, (T, D), jnp.float32)
    params = init_params(k_par)

    yseq = mask_ctc_inference(enc_out, params)
    # sanity: hypothesis framed by <mask> tokens and all ids in-vocab (no padded ids)
    assert yseq[0] == MASK_TOKEN and yseq[-1] == MASK_TOKEN
    assert np.all((yseq >= 0) & (yseq < V))
    print("KERNEL_OK")
</pallas_src>

<mosaic_0001>
module attributes {stable_mosaic.version = 11 : i64} {
  func.func @_ctc_kernel(%arg0: memref<16x32xbf16, #tpu.memory_space<vmem>>, %arg1: memref<32x128xbf16, #tpu.memory_space<vmem>>, %arg2: memref<1x128xf32, #tpu.memory_space<vmem>>, %arg3: memref<16x128xf32, #tpu.memory_space<vmem>>, %arg4: memref<16x128xi32, #tpu.memory_space<vmem>>) attributes {dimension_semantics = [], scalar_prefetch = 0 : i64, scratch_operands = 0 : i64, tpu.core_type = #tpu.core_type<tc>} {
    %c0 = arith.constant 0 : index
    %c0_0 = arith.constant 0 : index
    %0 = vector.load %arg0[%c0, %c0_0] : memref<16x32xbf16, #tpu.memory_space<vmem>>, vector<16x32xbf16>
    %c0_1 = arith.constant 0 : index
    %c0_2 = arith.constant 0 : index
    %1 = vector.load %arg1[%c0_1, %c0_2] : memref<32x128xbf16, #tpu.memory_space<vmem>>, vector<32x128xbf16>
    %cst = arith.constant dense<0.000000e+00> : vector<16x128xf32>
    %2 = tpu.matmul %0, %1, %cst {dimension_numbers = #tpu.dot_dimension_numbers<[1], [0], [0], [1], [0, 0, 1, 1], [], []>} : vector<16x32xbf16>, vector<32x128xbf16>, vector<16x128xf32> -> vector<16x128xf32>
    %c0_3 = arith.constant 0 : index
    %c0_4 = arith.constant 0 : index
    %3 = vector.load %arg2[%c0_3, %c0_4] : memref<1x128xf32, #tpu.memory_space<vmem>>, vector<1x128xf32>
    %4 = vector.broadcast %3 : vector<1x128xf32> to vector<16x128xf32>
    %5 = arith.addf %2, %4 : vector<16x128xf32>
    %cst_5 = arith.constant dense<0xFF800000> : vector<16xf32>
    %6 = vector.multi_reduction <maximumf>, %5, %cst_5 [1] : vector<16x128xf32> to vector<16xf32>
    %7 = vector.shape_cast %6 : vector<16xf32> to vector<16x1xf32>
    %8 = vector.broadcast %7 : vector<16x1xf32> to vector<16x128xf32>
    %9 = arith.subf %5, %8 : vector<16x128xf32>
    %10 = math.exp %9 : vector<16x128xf32>
    %cst_6 = arith.constant dense<0.000000e+00> : vector<16xf32>
    %11 = vector.multi_reduction <add>, %10, %cst_6 [1] : vector<16x128xf32> to vector<16xf32>
    %12 = vector.shape_cast %11 : vector<16xf32> to vector<16x1xf32>
    %cst_7 = arith.constant 1.000000e+00 : f32
    %13 = vector.broadcast %cst_7 : f32 to vector<16x1xf32>
    %14 = arith.divf %13, %12 : vector<16x1xf32>
    %15 = tpu.iota {dimensions = array<i32: 1>} : vector<16x128xi32>
    %16 = vector.broadcast %7 : vector<16x1xf32> to vector<16x128xf32>
    %17 = arith.cmpf oeq, %5, %16 : vector<16x128xf32>
    %c128_i32 = arith.constant 128 : i32
    %18 = vector.broadcast %c128_i32 : i32 to vector<16x128xi32>
    %19 = arith.select %17, %15, %18 : vector<16x128xi1>, vector<16x128xi32>
    %cst_8 = arith.constant dense<2147483647> : vector<16xi32>
    %20 = vector.multi_reduction <minsi>, %19, %cst_8 [1] : vector<16x128xi32> to vector<16xi32>
    %21 = vector.shape_cast %20 : vector<16xi32> to vector<16x1xi32>
    %22 = vector.shape_cast %14 : vector<16x1xf32> to vector<16x1xf32>
    %23 = vector.broadcast %22 : vector<16x1xf32> to vector<16x128xf32>
    %c0_9 = arith.constant 0 : index
    %c0_10 = arith.constant 0 : index
    %24 = vector.load %arg3[%c0_9, %c0_10] : memref<16x128xf32, #tpu.memory_space<vmem>>, vector<16x128xf32>
    tpu.vector_store %arg3[%c0_9, %c0_10], %23 {strides = array<i32>} : memref<16x128xf32, #tpu.memory_space<vmem>>, vector<16x128xf32>,
    %25 = vector.shape_cast %21 : vector<16x1xi32> to vector<16x1xi32>
    %26 = vector.broadcast %25 : vector<16x1xi32> to vector<16x128xi32>
    %c0_11 = arith.constant 0 : index
    %c0_12 = arith.constant 0 : index
    %27 = vector.load %arg4[%c0_11, %c0_12] : memref<16x128xi32, #tpu.memory_space<vmem>>, vector<16x128xi32>
    tpu.vector_store %arg4[%c0_11, %c0_12], %26 {strides = array<i32>} : memref<16x128xi32, #tpu.memory_space<vmem>>, vector<16x128xi32>,
    return
  }
}

module attributes {stable_mosaic.version = 11 : i64} {
  func.func @_refine_kernel(%arg0: memref<2xi32, #tpu.memory_space<smem>>, %arg1: memref<16x3xi32, #tpu.memory_space<vmem>>, %arg2: memref<16x32xbf16, #tpu.memory_space<vmem>>, %arg3: memref<192x128xbf16, #tpu.memory_space<vmem>>, %arg4: memref<1x128xf32, #tpu.memory_space<vmem>>, %arg5: memref<16x128xi32, #tpu.memory_space<vmem>>) attributes {dimension_semantics = [], scalar_prefetch = 0 : i64, scratch_operands = 0 : i64, tpu.core_type = #tpu.core_type<tc>} {
    %c0 = arith.constant 0 : index
    %0 = memref.load %arg0[%c0] : memref<2xi32, #tpu.memory_space<smem>>
    %c1 = arith.constant 1 : index
    %1 = memref.load %arg0[%c1] : memref<2xi32, #tpu.memory_space<smem>>
    %2 = arith.sitofp %1 : i32 to f32
    %c0_0 = arith.constant 0 : index
    %c0_1 = arith.constant 0 : index
    %3 = vector.load %arg1[%c0_0, %c0_1] : memref<16x3xi32, #tpu.memory_space<vmem>>, vector<16x3xi32>
    %4 = vector.extract_strided_slice %3 {offsets = [0, 0], sizes = [16, 1], strides = [1, 1]} : vector<16x3xi32> to vector<16x1xi32>
    %5 = vector.extract_strided_slice %3 {offsets = [0, 1], sizes = [16, 1], strides = [1, 1]} : vector<16x3xi32> to vector<16x1xi32>
    %6 = vector.extract_strided_slice %3 {offsets = [0, 2], sizes = [16, 1], strides = [1, 1]} : vector<16x3xi32> to vector<16x1xi32>
    %c0_i32 = arith.constant 0 : i32
    %7 = vector.broadcast %c0_i32 : i32 to vector<16x1xi32>
    %8 = arith.cmpi ne, %6, %7 : vector<16x1xi32>
    %c0_2 = arith.constant 0 : index
    %c0_3 = arith.constant 0 : index
    %9 = vector.load %arg2[%c0_2, %c0_3] : memref<16x32xbf16, #tpu.memory_space<vmem>>, vector<16x32xbf16>
    %c0_4 = arith.constant 0 : index
    %c0_5 = arith.constant 0 : index
    %10 = vector.load %arg3[%c0_4, %c0_5] : memref<192x128xbf16, #tpu.memory_space<vmem>>, vector<128x128xbf16>
    %c128 = arith.constant 128 : index
    %c0_6 = arith.constant 0 : index
    %11 = vector.load %arg3[%c128, %c0_6] : memref<192x128xbf16, #tpu.memory_space<vmem>>, vector<32x128xbf16>
    %c160 = arith.constant 160 : index
    %c0_7 = arith.constant 0 : index
    %12 = vector.load %arg3[%c160, %c0_7] : memref<192x128xbf16, #tpu.memory_space<vmem>>, vector<32x128xbf16>
    %c0_8 = arith.constant 0 : index
    %c0_9 = arith.constant 0 : index
    %13 = vector.load %arg4[%c0_8, %c0_9] : memref<1x128xf32, #tpu.memory_space<vmem>>, vector<1x128xf32>
    %cst = arith.constant dense<0.000000e+00> : vector<16x128xf32>
    %14 = tpu.matmul %9, %11, %cst {dimension_numbers = #tpu.dot_dimension_numbers<[1], [0], [0], [1], [0, 0, 1, 1], [], []>} : vector<16x32xbf16>, vector<32x128xbf16>, vector<16x128xf32> -> vector<16x128xf32>
    %15 = vector.extract_strided_slice %14 {offsets = [0, 0], sizes = [16, 32], strides = [1, 1]} : vector<16x128xf32> to vector<16x32xf32>
    %16 = arith.truncf %15 : vector<16x32xf32> to vector<16x32xbf16>
    %17 = vector.extract_strided_slice %14 {offsets = [0, 32], sizes = [16, 32], strides = [1, 1]} : vector<16x128xf32> to vector<16x32xf32>
    %18 = arith.truncf %17 : vector<16x32xf32> to vector<16x32xbf16>
    %19 = tpu.iota {dimensions = array<i32: 1>} : vector<16x128xi32>
    %20 = tpu.iota {dimensions = array<i32: 0>} : vector<16x16xi32>
    %21 = tpu.iota {dimensions = array<i32: 1>} : vector<16x16xi32>
    %22 = arith.cmpi eq, %20, %21 : vector<16x16xi32>
    %c1_i32 = arith.constant 1 : i32
    %23 = arith.subi %0, %c1_i32 : i32
    %c0_i32_10 = arith.constant 0 : i32
    %24 = arith.subi %23, %c0_i32_10 : i32
    %25 = arith.addi %c0_i32_10, %24 : i32
    %c1_i32_11 = arith.constant 1 : i32
    %26:2 = scf.for %arg6 = %c0_i32_10 to %25 step %c1_i32_11 iter_args(%arg7 = %4, %arg8 = %5) -> (vector<16x1xi32>, vector<16x1xi32>)  : i32 {
      %c0_i32_25 = arith.constant 0 : i32
      %69 = vector.broadcast %c0_i32_25 : i32 to vector<16x1xi32>
      %70 = arith.cmpi ne, %arg8, %69 : vector<16x1xi32>
      %71 = vector.broadcast %arg7 : vector<16x1xi32> to vector<16x128xi32>
      %72 = arith.cmpi eq, %19, %71 : vector<16x128xi32>
      %cst_26 = arith.constant 1.000000e+00 : f32
      %cst_27 = arith.constant 0.000000e+00 : f32
      %73 = vector.broadcast %cst_26 : f32 to vector<16x128xf32>
      %74 = vector.broadcast %cst_27 : f32 to vector<16x128xf32>
      %75 = arith.select %72, %73, %74 : vector<16x128xi1>, vector<16x128xf32>
      %76 = arith.truncf %75 : vector<16x128xf32> to vector<16x128xbf16>
      %cst_28 = arith.constant dense<0.000000e+00> : vector<16x128xf32>
      %77 = tpu.matmul %76, %10, %cst_28 {dimension_numbers = #tpu.dot_dimension_numbers<[1], [0], [0], [1], [0, 0, 1, 1], [], []>} : vector<16x128xbf16>, vector<128x128xbf16>, vector<16x128xf32> -> vector<16x128xf32>
      %78 = vector.extract_strided_slice %77 {offsets = [0, 0], sizes = [16, 32], strides = [1, 1]} : vector<16x128xf32> to vector<16x32xf32>
      %79 = vector.extract_strided_slice %77 {offsets = [0, 32], sizes = [16, 32], strides = [1, 1]} : vector<16x128xf32> to vector<16x32xf32>
      %80 = arith.truncf %79 : vector<16x32xf32> to vector<16x32xbf16>
      %cst_29 = arith.constant dense<0.000000e+00> : vector<16x16xf32>
      %81 = tpu.matmul %80, %16, %cst_29 {dimension_numbers = #tpu.dot_dimension_numbers<[1], [1], [0], [0], [0, 0, 1, 0], [], []>} : vector<16x32xbf16>, vector<16x32xbf16>, vector<16x16xf32> -> vector<16x16xf32>
      %cst_30 = arith.constant dense<0xFF800000> : vector<16xf32>
      %82 = vector.multi_reduction <maximumf>, %81, %cst_30 [1] : vector<16x16xf32> to vector<16xf32>
      %83 = vector.shape_cast %82 : vector<16xf32> to vector<16x1xf32>
      %84 = vector.broadcast %83 : vector<16x1xf32> to vector<16x16xf32>
      %85 = arith.subf %81, %84 : vector<16x16xf32>
      %86 = math.exp %85 : vector<16x16xf32>
      %cst_31 = arith.constant dense<0.000000e+00> : vector<16xf32>
      %87 = vector.multi_reduction <add>, %86, %cst_31 [1] : vector<16x16xf32> to vector<16xf32>
      %88 = vector.shape_cast %87 : vector<16xf32> to vector<16x1xf32>
      %89 = tpu.reciprocal %88 {approx = true} : vector<16x1xf32> -> vector<16x1xf32>
      %90 = vector.broadcast %89 : vector<16x1xf32> to vector<16x16xf32>
      %91 = arith.mulf %86, %90 : vector<16x16xf32>
      %92 = arith.truncf %91 : vector<16x16xf32> to vector<16x16xbf16>
      %cst_32 = arith.constant dense<0.000000e+00> : vector<16x32xf32>
      %93 = tpu.matmul %92, %18, %cst_32 {dimension_numbers = #tpu.dot_dimension_numbers<[1], [0], [0], [1], [0, 0, 1, 1], [], []>} : vector<16x16xbf16>, vector<16x32xbf16>, vector<16x32xf32> -> vector<16x32xf32>
      %94 = arith.addf %93, %78 : vector<16x32xf32>
      %95 = arith.truncf %94 : vector<16x32xf32> to vector<16x32xbf16>
      %cst_33 = arith.constant dense<0.000000e+00> : vector<16x128xf32>
      %96 = tpu.matmul %95, %12, %cst_33 {dimension_numbers = #tpu.dot_dimension_numbers<[1], [0], [0], [1], [0, 0, 1, 1], [], []>} : vector<16x32xbf16>, vector<32x128xbf16>, vector<16x128xf32> -> vector<16x128xf32>
      %97 = vector.broadcast %13 : vector<1x128xf32> to vector<16x128xf32>
      %98 = arith.addf %96, %97 : vector<16x128xf32>
      %cst_34 = arith.constant dense<0xFF800000> : vector<16xf32>
      %99 = vector.multi_reduction <maximumf>, %98, %cst_34 [1] : vector<16x128xf32> to vector<16xf32>
      %100 = vector.shape_cast %99 : vector<16xf32> to vector<16x1xf32>
      %101 = vector.broadcast %100 : vector<16x1xf32> to vector<16x128xf32>
      %102 = arith.cmpf oeq, %98, %101 : vector<16x128xf32>
      %c128_i32_35 = arith.constant 128 : i32
      %103 = vector.broadcast %c128_i32_35 : i32 to vector<16x128xi32>
      %104 = arith.select %102, %19, %103 : vector<16x128xi1>, vector<16x128xi32>
      %cst_36 = arith.constant dense<2147483647> : vector<16xi32>
      %105 = vector.multi_reduction <minsi>, %104, %cst_36 [1] : vector<16x128xi32> to vector<16xi32>
      %106 = vector.shape_cast %105 : vector<16xi32> to vector<16x1xi32>
      %cst_37 = arith.constant -1.000000e+30 : f32
      %107 = vector.broadcast %cst_37 : f32 to vector<16x1xf32>
      %108 = arith.select %70, %100, %107 : vector<16x1xi1>, vector<16x1xf32>
      %109 = vector.shape_cast %108 : vector<16x1xf32> to vector<16x1xf32>
      %110 = vector.broadcast %109 : vector<16x1xf32> to vector<16x16xf32>
      %cst_38 = arith.constant 0.000000e+00 : f32
      %111 = vector.broadcast %cst_38 : f32 to vector<16x16xf32>
      %112 = arith.select %22, %110, %111 : vector<16x16xi1>, vector<16x16xf32>
      %cst_39 = arith.constant dense<0.000000e+00> : vector<16xf32>
      %113 = vector.multi_reduction <add>, %112, %cst_39 [0] : vector<16x16xf32> to vector<16xf32>
      %114 = vector.shape_cast %113 : vector<16xf32> to vector<1x16xf32>
      %115 = vector.broadcast %114 : vector<1x16xf32> to vector<16x16xf32>
      %116 = vector.broadcast %108 : vector<16x1xf32> to vector<16x16xf32>
      %117 = arith.cmpf ogt, %115, %116 : vector<16x16xf32>
      %118 = vector.broadcast %114 : vector<1x16xf32> to vector<16x16xf32>
      %119 = vector.broadcast %108 : vector<16x1xf32> to vector<16x16xf32>
      %120 = arith.cmpf oeq, %118, %119 : vector<16x16xf32>
      %121 = arith.cmpi slt, %21, %20 : vector<16x16xi32>
      %122 = arith.andi %120, %121 : vector<16x16xi1>
      %123 = arith.ori %117, %122 : vector<16x16xi1>
      %124 = arith.extui %123 : vector<16x16xi1> to vector<16x16xi32>
      %125 = arith.sitofp %124 : vector<16x16xi32> to vector<16x16xf32>
      %cst_40 = arith.constant dense<0.000000e+00> : vector<16xf32>
      %126 = vector.multi_reduction <add>, %125, %cst_40 [1] : vector<16x16xf32> to vector<16xf32>
      %127 = vector.shape_cast %126 : vector<16xf32> to vector<16x1xf32>
      %128 = vector.broadcast %2 : f32 to vector<16x1xf32>
      %129 = arith.cmpf olt, %127, %128 : vector<16x1xf32>
      %130 = arith.andi %70, %129 : vector<16x1xi1>
      %131 = arith.select %130, %106, %arg7 : vector<16x1xi1>, vector<16x1xi32>
      %c49_i32 = arith.constant 49 : i32
      %132 = vector.broadcast %c49_i32 : i32 to vector<16x1xi32>
      %133 = arith.cmpi eq, %131, %132 : vector<16x1xi32>
      %134 = arith.andi %133, %8 : vector<16x1xi1>
      %135 = arith.extui %134 : vector<16x1xi1> to vector<16x1xi32>
      scf.yield %131, %135 : vector<16x1xi32>, vector<16x1xi32>
    }
    %27 = vector.broadcast %26#0 : vector<16x1xi32> to vector<16x128xi32>
    %28 = arith.cmpi eq, %19, %27 : vector<16x128xi32>
    %cst_12 = arith.constant 1.000000e+00 : f32
    %cst_13 = arith.constant 0.000000e+00 : f32
    %29 = vector.broadcast %cst_12 : f32 to vector<16x128xf32>
    %30 = vector.broadcast %cst_13 : f32 to vector<16x128xf32>
    %31 = arith.select %28, %29, %30 : vector<16x128xi1>, vector<16x128xf32>
    %32 = arith.truncf %31 : vector<16x128xf32> to vector<16x128xbf16>
    %cst_14 = arith.constant dense<0.000000e+00> : vector<16x128xf32>
    %33 = tpu.matmul %32, %10, %cst_14 {dimension_numbers = #tpu.dot_dimension_numbers<[1], [0], [0], [1], [0, 0, 1, 1], [], []>} : vector<16x128xbf16>, vector<128x128xbf16>, vector<16x128xf32> -> vector<16x128xf32>
    %34 = vector.extract_strided_slice %33 {offsets = [0, 0], sizes = [16, 32], strides = [1, 1]} : vector<16x128xf32> to vector<16x32xf32>
    %35 = vector.extract_strided_slice %33 {offsets = [0, 32], sizes = [16, 32], strides = [1, 1]} : vector<16x128xf32> to vector<16x32xf32>
    %36 = arith.truncf %35 : vector<16x32xf32> to vector<16x32xbf16>
    %cst_15 = arith.constant dense<0.000000e+00> : vector<16x16xf32>
    %37 = tpu.matmul %36, %16, %cst_15 {dimension_numbers = #tpu.dot_dimension_numbers<[1], [1], [0], [0], [0, 0, 1, 0], [], []>} : vector<16x32xbf16>, vector<16x32xbf16>, vector<16x16xf32> -> vector<16x16xf32>
    %cst_16 = arith.constant dense<0xFF800000> : vector<16xf32>
    %38 = vector.multi_reduction <maximumf>, %37, %cst_16 [1] : vector<16x16xf32> to vector<16xf32>
    %39 = vector.shape_cast %38 : vector<16xf32> to vector<16x1xf32>
    %40 = vector.broadcast %39 : vector<16x1xf32> to vector<16x16xf32>
    %41 = arith.subf %37, %40 : vector<16x16xf32>
    %42 = math.exp %41 : vector<16x16xf32>
    %cst_17 = arith.constant dense<0.000000e+00> : vector<16xf32>
    %43 = vector.multi_reduction <add>, %42, %cst_17 [1] : vector<16x16xf32> to vector<16xf32>
    %44 = vector.shape_cast %43 : vector<16xf32> to vector<16x1xf32>
    %45 = tpu.reciprocal %44 {approx = true} : vector<16x1xf32> -> vector<16x1xf32>
    %46 = vector.broadcast %45 : vector<16x1xf32> to vector<16x16xf32>
    %47 = arith.mulf %42, %46 : vector<16x16xf32>
    %48 = arith.truncf %47 : vector<16x16xf32> to vector<16x16xbf16>
    %cst_18 = arith.constant dense<0.000000e+00> : vector<16x32xf32>
    %49 = tpu.matmul %48, %18, %cst_18 {dimension_numbers = #tpu.dot_dimension_numbers<[1], [0], [0], [1], [0, 0, 1, 1], [], []>} : vector<16x16xbf16>, vector<16x32xbf16>, vector<16x32xf32> -> vector<16x32xf32>
    %50 = arith.addf %49, %34 : vector<16x32xf32>
    %51 = arith.truncf %50 : vector<16x32xf32> to vector<16x32xbf16>
    %cst_19 = arith.constant dense<0.000000e+00> : vector<16x128xf32>
    %52 = tpu.matmul %51, %12, %cst_19 {dimension_numbers = #tpu.dot_dimension_numbers<[1], [0], [0], [1], [0, 0, 1, 1], [], []>} : vector<16x32xbf16>, vector<32x128xbf16>, vector<16x128xf32> -> vector<16x128xf32>
    %53 = vector.broadcast %13 : vector<1x128xf32> to vector<16x128xf32>
    %54 = arith.addf %52, %53 : vector<16x128xf32>
    %cst_20 = arith.constant dense<0xFF800000> : vector<16xf32>
    %55 = vector.multi_reduction <maximumf>, %54, %cst_20 [1] : vector<16x128xf32> to vector<16xf32>
    %56 = vector.shape_cast %55 : vector<16xf32> to vector<16x1xf32>
    %57 = vector.broadcast %56 : vector<16x1xf32> to vector<16x128xf32>
    %58 = arith.cmpf oeq, %54, %57 : vector<16x128xf32>
    %c128_i32 = arith.constant 128 : i32
    %59 = vector.broadcast %c128_i32 : i32 to vector<16x128xi32>
    %60 = arith.select %58, %19, %59 : vector<16x128xi1>, vector<16x128xi32>
    %cst_21 = arith.constant dense<2147483647> : vector<16xi32>
    %61 = vector.multi_reduction <minsi>, %60, %cst_21 [1] : vector<16x128xi32> to vector<16xi32>
    %62 = vector.shape_cast %61 : vector<16xi32> to vector<16x1xi32>
    %c0_i32_22 = arith.constant 0 : i32
    %63 = vector.broadcast %c0_i32_22 : i32 to vector<16x1xi32>
    %64 = arith.cmpi ne, %26#1, %63 : vector<16x1xi32>
    %65 = arith.select %64, %62, %26#0 : vector<16x1xi1>, vector<16x1xi32>
    %66 = vector.shape_cast %65 : vector<16x1xi32> to vector<16x1xi32>
    %67 = vector.broadcast %66 : vector<16x1xi32> to vector<16x128xi32>
    %c0_23 = arith.constant 0 : index
    %c0_24 = arith.constant 0 : index
    %68 = vector.load %arg5[%c0_23, %c0_24] : memref<16x128xi32, #tpu.memory_space<vmem>>, vector<16x128xi32>
    tpu.vector_store %arg5[%c0_23, %c0_24], %67 {strides = array<i32>} : memref<16x128xi32, #tpu.memory_space<vmem>>, vector<16x128xi32>,
    return
  }
}

</mosaic_0001>

<bundles_post_ra>
// kernel: _device_forward.2
= control target key start
LH: loop header
LB: loop body
LE: loop exit
PB: predicated region body
PF: predicated region fallthrough
CT: control target
= control target key end

     0   :  { %v185_v0 = vmov 0.0   ;;  %vm186_vm0 = vmmov 0   ;;  %vm47_vm1 = vcmask 261120   ;;  %v110_v11 = vlaneseq  ;;  %s236_s1 = inlined_call_operand.vmem [shape: bf16[32,128], index: 1, kind: input, shape index: {}]   ;;  %s237_s0 = inlined_call_operand.vmem [shape: bf16[16,32], index: 0, kind: input, shape index: {}]   ;;  %s238_s2 = inlined_call_operand.vmem [shape: f32[1,128], index: 2, kind: input, shape index: {}]   ;;  %s239_s3 = inlined_call_operand.vmem [shape: f32[16,128], index: 3, kind: output, shape index: {0}]   ;;  %s240_s4 = inlined_call_operand.vmem [shape: s32[16,128], index: 4, kind: output, shape index: {1}]  }
   0x1   :  { %164 = vmatprep.subr.bf16.mxu0 %v185_v0  ;;  %v174_v1 = vld [vmem:[%s236_s1] sm:$0xff]   ;;  %168 = vmatprep.mubr.msk.bf16.mxu0 %vm186_vm0, %v185_v0  ;;  %v175_v2 = vld [vmem:[%s236_s1 + $0x8] sm:$0xff]  }
   0x2   :  { %165 = vmatpush3.bf16.msra.mxu0 %v174_v1  ;;  %v176_v3 = vld [vmem:[%s237_s0] sm:$0xff]   ;;  %v111_v12 = vand.u32 127, %v110_v11 }
   0x3   :  { %166 = vmatprep.subr.bf16.mxu0 %v185_v0  ;;  %v156_v4 = vld [vmem:[%s238_s2] ss:$0 sm:$0xff] }
   0x6   :  { %167 = vmatpush3.bf16.msra.mxu0 %v175_v2 }
   0x9   :  { %169 = vmatmul.mubr.msk.bf16.vlgmr.msra.gmra.mrb[0].mxu0 %vm47_vm1, %v176_v3 }
  0xdc   :  { %v85_v5 = vpop.f32.mrb[0].mxu0 }
  0xdd   :  { %v86_v6 = vadd.f32 %v156_v4, %v85_v5  ;;  %v170_v7 = vpop.f32.mrb[1].mxu0 }
  0xde   :  { %v88_v8 = vpop.f32.mrb[2].mxu0 }
  0xdf   :  { %92 = vmax.xlane.f32.xlu0 %v86_v6  ;;  %v171_v9 = vpop.f32.mrb[3].mxu0  ;;  %v89_v10 = vadd.f32 %v156_v4, %v88_v8 }
  0xe3   :  { %94 = vmax.xlane.f32.xlu0 %v89_v10 }
 0x16c   :  { %v93_v13 = vpop.xlane.xlu0 %92 }
 0x16d   :  { %v96_v14 = vsub.f32 %v86_v6, %v93_v13  ;;  %vm112_vm2 = vcmp.eq.f32.partialorder %v86_v6, %v93_v13 }
 0x16e   :  { %v114_v15 = vsel %vm112_vm2, %v111_v12, 128 }
 0x16f   :  { %v98_v16 = vmul.f32 1.442695, %v96_v14  ;;  %v117_v17 = vshra.s32 %v114_v15, 16  ;;  %v116_v27 = vand.u32 65535, %v114_v15 }
 0x170   :  { %v95_v18 = vpop.xlane.xlu0 %94 }
 0x171   :  { %177 = vpow2.f32 %v98_v16  ;;  %v97_v19 = vsub.f32 %v89_v10, %v95_v18  ;;  %vm113_vm3 = vcmp.eq.f32.partialorder %v89_v10, %v95_v18  ;;  %v119_v20 = vcvt.s32.f32 %v117_v17 }
 0x172   :  { %v115_v21 = vsel %vm113_vm3, %v111_v12, 128  ;;  %v118_v29 = vcvt.s32.f32 %v116_v27 }
 0x173   :  { %v100_v22 = vmul.f32 1.442695, %v97_v19  ;;  %120 = vmin.xlane.f32.xlu1 %v119_v20  ;;  %v131_v23 = vshra.s32 %v115_v21, 16  ;;  %v130_v30 = vand.u32 65535, %v115_v21 }
 0x175   :  { %179 = vpow2.f32 %v100_v22  ;;  %v133_v24 = vcvt.s32.f32 %v131_v23  ;;  %v132_v33 = vcvt.s32.f32 %v130_v30 }
 0x177   :  { %134 = vmin.xlane.f32.xlu1 %v133_v24 }
 0x17b   :  { %v178_v25 = vpop.eup %177 }
 0x17c   :  { %102 = vadd.xlane.f32.xlu0 %v178_v25 }
 0x17f   :  { %v180_v26 = vpop.eup %179 }
 0x180   :  { %104 = vadd.xlane.f32.xlu1 %v180_v26 }
 0x200   :  { %v121_v28 = vpop.xlane.xlu1 %120 }
 0x201   :  { %vm122_vm4 = vcmp.eq.f32.partialorder %v119_v20, %v121_v28  ;;  %v127_v39 = vcvt.f32.s32 %v121_v28 }
 0x202   :  { %v123_v31 = vsel %vm122_vm4, %v118_v29, inf }
 0x203   :  { %124 = vmin.xlane.f32.xlu0 %v123_v31  ;;  %v128_v41 = vshll.u32 %v127_v39, 16 }
 0x204   :  { %v135_v32 = vpop.xlane.xlu1 %134 }
 0x205   :  { %vm136_vm5 = vcmp.eq.f32.partialorder %v133_v24, %v135_v32  ;;  %v141_v42 = vcvt.f32.s32 %v135_v32 }
 0x206   :  { %v137_v34 = vsel %vm136_vm5, %v132_v33, inf }
 0x207   :  { %138 = vmin.xlane.f32.xlu1 %v137_v34  ;;  %v142_v46 = vshll.u32 %v141_v42, 16 }
 0x209   :  { %v103_v35 = vpop.xlane.xlu0 %102 }
 0x20a   :  { %181 = vrcp.f32 %v103_v35 }
 0x20d   :  { %v105_v36 = vpop.xlane.xlu1 %104 }
 0x20e   :  { %183 = vrcp.f32 %v105_v36 }
 0x214   :  { %v182_v37 = vpop.eup %181 }
 0x215   :  { %144 = vst [vmem:[%s239_s3] sm:$0xff] %v182_v37 }
 0x218   :  { %v184_v38 = vpop.eup %183 }
 0x219   :  { %145 = vst [vmem:[%s239_s3 + $0x8] sm:$0xff] %v184_v38 }
 0x290   :  { %v125_v40 = vpop.xlane.xlu0 %124 }
 0x291   :  { %v126_v43 = vcvt.f32.s32 %v125_v40 }
 0x293   :  { %v129_v44 = vadd.s32 %v128_v41, %v126_v43 }
 0x294   :  { %v139_v45 = vpop.xlane.xlu1 %138 }
 0x295   :  { %146 = vst [vmem:[%s240_s4] sm:$0xff] %v129_v44  ;;  %v140_v47 = vcvt.f32.s32 %v139_v45 }
 0x297   :  { %v143_v48 = vadd.s32 %v142_v46, %v140_v47 }
 0x299   :  { %147 = vst [vmem:[%s240_s4 + $0x8] sm:$0xff] %v143_v48 }

// kernel: _device_forward.3
= control target key start
LH: loop header
LB: loop body
LE: loop exit
PB: predicated region body
PF: predicated region fallthrough
CT: control target
= control target key end

     0   :  { %10 = vsyncpa [#allocation3], 0  ;;  %s1705_s0 = inlined_call_operand.vmem [shape: s32[2], index: 0, kind: input, shape index: {}]   ;;  %s1706_s1 = inlined_call_operand.vmem [shape: s32[16,3], index: 1, kind: input, shape index: {}]   ;;  %s1707_s2 = inlined_call_operand.vmem [shape: bf16[16,32], index: 2, kind: input, shape index: {}]   ;;  %s1708_s3 = inlined_call_operand.vmem [shape: bf16[192,128], index: 3, kind: input, shape index: {}]   ;;  %s1709_s4 = inlined_call_operand.vmem [shape: f32[1,128], index: 4, kind: input, shape index: {}]   ;;  %s1710_s5 = inlined_call_operand.vmem [shape: s32[16,128], index: 5, kind: output, shape index: {}]  }
   0x1   :  { %s17_s20 = sshll.u32 %s1705_s0, 4  ;;  %s18_s20 = int_to_ptr.vmem [resolvable:$true] %s17_s20 }
   0x2   :  { %s1179_s21 = scalar_lea.vmem %s18_s20, 16  ;;  %p1184_p1 = scmp.lt.s32.totalorder %s18_s20, %s18_s20 }
   0x3   :  { %p1180_p0 = scmp.ne.s32.totalorder %s18_s20, %s1179_s21  ;;  %p1185_p2 = scmp.lt.s32.totalorder %s1179_s21, %s1179_s21 }
   0x5   :  { %p1186_p3 = por %p1185_p2, %p1184_p1 }
   0x7   :  { %p1187_p4 = pnand %p1186_p3, %p1180_p0 }
   0x9   :  { %1190 = shalt.err (!%p1187_p4)
}
   0xa   :  { %s1265_s22 = smov [#allocation2]  }
   0xb   :  { %20 = dma.vmem_to_smem %s18_s20, 16, %s1265_s22, [#allocation3]  }
   0xc   :  { %1227 = dma.done.wait [#allocation3], 16  }
   0xd   :  { %1228 = vsyncadd [#allocation3], 4294967280 }
   0xe   :  { %32 = sfence }
   0xf   :  { %s1314_s23 = sld [smem:[#allocation2 + $0x1]]  ;;  %v1319_v0 = vld [vmem:[%s1706_s1] sm:$0xff]   ;;  %v1324_v1 = vld [vmem:[%s1706_s1 + $0x8] sm:$0xff]   ;;  %v1351_v6 = vld [vmem:[%s1708_s3 + $0x10] sm:$0xf]  ;;  %v1266_v24 = vmov 0.0   ;;  %v131_v27 = vlaneseq }
  0x10   :  { %vm39_vm0 = vcmp.ne.s32.totalorder %v1319_v0, 0  ;;  %vm40_vm1 = vcmp.ne.s32.totalorder %v1324_v1, 0  ;;  %v1331_v2 = vld [vmem:[%s1708_s3] sm:$0xf]  ;;  %v1336_v3 = vld [vmem:[%s1708_s3 + $0x4] sm:$0xf]  ;;  %979 = vmatprep.subr.bf16.mxu0 %v1266_v24  ;;  %v1715_v36 = vmov %v1324_v1  ;;  %v1716_v37 = vmov %v1319_v0 }
  0x11   :  { %v1341_v4 = vld [vmem:[%s1708_s3 + $0x8] sm:$0xf]  ;;  %v1346_v5 = vld [vmem:[%s1708_s3 + $0xc] sm:$0xf]  ;;  %v1356_v7 = vld [vmem:[%s1708_s3 + $0x14] sm:$0xf]  ;;  %v1717_v38 = vmov %v1324_v1  ;;  %v1718_v39 = vmov %v1319_v0 }
  0x12   :  { %v1361_v8 = vld [vmem:[%s1708_s3 + $0x18] sm:$0xf]  ;;  %v1366_v9 = vld [vmem:[%s1708_s3 + $0x1c] sm:$0xf]  ;;  %v1371_v10 = vld [vmem:[%s1708_s3 + $0x20] sm:$0xf] }
  0x13   :  { %v1376_v11 = vld [vmem:[%s1708_s3 + $0x24] sm:$0xf]  ;;  %v1381_v12 = vld [vmem:[%s1708_s3 + $0x28] sm:$0xf]  ;;  %v1386_v13 = vld [vmem:[%s1708_s3 + $0x2c] sm:$0xf] }
  0x14   :  { %v1391_v14 = vld [vmem:[%s1708_s3 + $0x30] sm:$0xf]  ;;  %v1396_v15 = vld [vmem:[%s1708_s3 + $0x34] sm:$0xf]  ;;  %v1402_v16 = vld [vmem:[%s1708_s3 + $0x38] sm:$0xf] }
  0x15   :  { %s36_s29 = scvt.s32.f32 %s1314_s23  ;;  %v1407_v17 = vld [vmem:[%s1708_s3 + $0x3c] sm:$0xf]  ;;  %v1412_v18 = vld [vmem:[%s1708_s3 + $0x50] sm:$0xf]  ;;  %v1417_v19 = vld [vmem:[%s1708_s3 + $0x54] sm:$0xf] }
  0x16   :  { %v1422_v20 = vld [vmem:[%s1708_s3 + $0x58] sm:$0xf]  ;;  %v1427_v21 = vld [vmem:[%s1708_s3 + $0x5c] sm:$0xf]  ;;  %v1432_v22 = vld [vmem:[%s1709_s4] sm:$0x1] }
  0x17   :  { %v1155_v23 = vld [vmem:[%s1708_s3 + $0x40] sm:$0xff]   ;;  %v1156_v25 = vld [vmem:[%s1708_s3 + $0x48] sm:$0xff]   ;;  %vm1712_vm2 = vmmov 0   ;;  %vm1711_vm3 = vcmask 261120   ;;  %s1448_s24 = sld [smem:[#allocation2]]  ;;  %v1450_v28 = vshrl.u32 %v131_v27, 7 }
  0x18   :  { %980 = vmatpush3.bf16.msra.mxu0 %v1155_v23  ;;  %983 = vmatprep.mubr.msk.bf16.mxu0 %vm1712_vm2, %v1266_v24  ;;  %v1157_v26 = vld [vmem:[%s1707_s2] sm:$0xff]   ;;  %v1452_v29 = vand.u32 127, %v131_v27 }
  0x19   :  { %981 = vmatprep.subr.bf16.mxu0 %v1266_v24  ;;  %v1455_v30 = vadd.s32 8, %v1450_v28 }
  0x1c   :  { %982 = vmatpush3.bf16.msra.mxu0 %v1156_v25 }
  0x1d   :  { %s910_s2 = sadd.s32 4294967295, %s1448_s24 }
  0x1e   :  { %p911_p5 = scmp.le.s32.totalorder %s910_s2, 0 }
  0x1f   :  { %984 = vmatmul.mubr.msk.bf16.vlgmr.msra.gmra.mrb[0].mxu0 %vm1711_vm3, %v1157_v26  ;;  %v1719_v40 = vmov (!%p911_p5), %v1324_v1  ;;  %v1720_v41 = vmov (!%p911_p5), %v1319_v0  ;;  %v1721_v42 = vmov (!%p911_p5), %v1324_v1  ;;  %v1722_v43 = vmov (!%p911_p5), %v1319_v0  ;;  %s1490_s3 = smov (!%p911_p5), 0  }
  0xef   :  { %894 = sbr.rel (%p911_p5) target bundleno = 2265 (0x8d9), region = 45 }
  0xf2   :  { %v123_v31 = vpop.f32.mrb[0].mxu0 }
  0xf3   :  { %v985_v32 = vpop.f32.mrb[1].mxu0 }
  0xf4   :  { %v126_v33 = vpop.f32.mrb[2].mxu0 }
  0xf5   :  { %v1462_v34 = vpack.c.bf16 %v126_v33, %v123_v31  ;;  %v986_v35 = vpop.f32.mrb[3].mxu0 }
  0xf6 LB: > { %v1268_v44 = vmov 0   ;;  %v1269_v45 = vmov 0.0   ;;  %v912_v46 = vcombine.low %v1331_v2, %v1336_v3  ;;  %v913_v47 = vcombine.low %v1341_v4, %v1346_v5  ;;  %s1272_s25 = smov 96   ;;  %s1274_s0 = smov 1   ;;  %s1247_s3 = sphi %s1490_s3, %s142_s3   ;;  %v1243_v43 = vphi %v1722_v43, %v1730_v43   ;;  %v1239_v42 = vphi %v1721_v42, %v1729_v42   ;;  %v1235_v41 = vphi %v1720_v41, %v1728_v41   ;;  %v1231_v40 = vphi %v1719_v40, %v1727_v40  }
  0xf7   : > { %1158 = vset.pattern.permute.xlu0 %v1268_v44  ;;  %987 = vmatprep.subr.bf16.mxu0 %v1269_v45  ;;  %v914_v48 = vcombine.low %v1351_v6, %v1356_v7  ;;  %vm1270_vm6 = vmmov 0   ;;  %v915_v49 = vcombine.low %v1361_v8, %v1366_v9  ;;  %v916_v50 = vcombine.low %v1371_v10, %v1376_v11  ;;  %s1275_s26 = smov 127   ;;  %s142_s3 = sadd.s32 1, %s1247_s3  }
  0xf8   : > { %152 = vperm.xlu0 %1158, %v1243_v43   ;;  %988 = vmatpush3.bf16.msra.mxu0 %v912_v46  ;;  %v917_v51 = vcombine.low %v1381_v12, %v1386_v13  ;;  %v918_v52 = vcombine.low %v1391_v14, %v1396_v15  ;;  %v919_v53 = vcombine.low %v1402_v16, %v1407_v17  ;;  %v1271_v56 = vmov 1.0|1.0   ;;  %p141_p6 = scmp.ge.s32.totalorder %s142_s3, %s910_s2 }
  0xf9   : > { %1007 = vmatprep.subr.bf16.mxu1 %v1269_v45  ;;  %989 = vmatprep.subr.bf16.mxu0 %v1269_v45  ;;  %vm1723_vm3 = vcmask 261120   ;;  %vm302_vm10 = vcmask 130048   ;;  %vm1714_vm11 = vcmp.ne.s32.totalorder %v1235_v41, 0  ;;  %vm150_vm12 = vcmp.ne.s32.totalorder %v1231_v40, 0 }
  0xfa   : > { %1003 = vmatprep.mubr.msk.bf16.mxu0 %vm1270_vm6, %v1269_v45  ;;  %1009 = vmatprep.mubr.msk.bf16.mxu1 %vm1270_vm6, %v1269_v45  ;;  %v259_v57 = vsel %vm1723_vm3, %v1462_v34, 0  ;;  %vm1724_vm5 = vcmp.eq.s32.totalorder %v1455_v30, %v1452_v29  ;;  %vm1725_vm4 = vcmp.eq.s32.totalorder %v1450_v28, %v1452_v29 }
  0xfb   : > { %1008 = vmatpush3.bf16.xpose.msra.mxu1 %v259_v57  ;;  %v924_v57 = vcombine.low %v1412_v18, %v1417_v19 }
  0xfc   : > { %155 = vperm.xlu0 %1158, %v1239_v42   ;;  %990 = vmatpush3.bf16.msra.mxu0 %v913_v47 }
  0xfd   : > { %991 = vmatprep.subr.bf16.mxu0 %v1269_v45  ;;  %1013 = vmatprep.subr.bf16.mxu1 %v1269_v45 }
 0x100   : > { %992 = vmatpush3.bf16.msra.mxu0 %v914_v48 }
 0x101   : > { %993 = vmatprep.subr.bf16.mxu0 %v1269_v45 }
 0x104   : > { %994 = vmatpush3.bf16.msra.mxu0 %v915_v49 }
 0x105   : > { %995 = vmatprep.subr.bf16.mxu0 %v1269_v45 }
 0x108   : > { %996 = vmatpush3.bf16.msra.mxu0 %v916_v50 }
 0x109   : > { %997 = vmatprep.subr.bf16.mxu0 %v1269_v45 }
 0x10c   : > { %998 = vmatpush3.bf16.msra.mxu0 %v917_v51 }
 0x10d   : > { %999 = vmatprep.subr.bf16.mxu0 %v1269_v45 }
 0x110   : > { %1000 = vmatpush3.bf16.msra.mxu0 %v918_v52 }
 0x111   : > { %1001 = vmatprep.subr.bf16.mxu0 %v1269_v45 }
 0x114   : > { %1002 = vmatpush3.bf16.msra.mxu0 %v919_v53 }
 0x177   : > { %v153_v54 = vpop.permute.xlu0 %152 }
 0x178   : > { %vm157_vm7 = vcmp.eq.s32.totalorder %v1452_v29, %v153_v54 }
 0x17b   : > { %v156_v55 = vpop.permute.xlu0 %155 }
 0x17c   : > { %vm158_vm8 = vcmp.eq.s32.totalorder %v1452_v29, %v156_v55 }
 0x17d   : > { %vm920_vm9 = vmpackc.low %vm158_vm8, %vm157_vm7  ;;  %vm500_vm8 = vcmp.lt.s32.totalorder %v1452_v29, %v1450_v28 }
 0x17e   : > { %1004 = vmatmul.mubr.msk.bf16.vlgmr.msra.gmra.mrb[0].mxu0 %vm920_vm9, %v1271_v56 }
 0x251   : > { %v244_v58 = vpop.f32.mrb[0].mxu0 }
 0x252   : > { %v1005_v59 = vpop.f32.mrb[1].mxu0 }
 0x253   : > { %v247_v60 = vpop.f32.mrb[2].mxu0 }
 0x254   : > { %v1006_v61 = vpop.f32.mrb[3].mxu0  ;;  %v251_v62 = vpack.c.bf16 %v247_v60, %v244_v58 }
 0x255   : > { %v925_v61 = vcombine.low %v1422_v20, %v1427_v21 }
 0x256   : > { %253 = vrot.lane.b32.xlu1 %v251_v62, %s1272_s25 }
 0x2c8   : > { %v254_v63 = vpop.permute.xlu1 %253 }
 0x2c9   : > { %1010 = vmatmul.mubr.msk.bf16.vlgmr.msra.gmra.mrb[0].mxu1 %vm1723_vm3, %v254_v63 }
 0x2ca   : > { %1015 = vmatprep.mubr.msk.bf16.mxu1 %vm1270_vm6, %v1269_v45 }
 0x39c   : > { %v295_v23 = vpop.f32.mrb[0].mxu1 }
 0x39d   : > { %v1011_v25 = vpop.f32.mrb[1].mxu1  ;;  %v303_v26 = vsel %vm302_vm10, %v295_v23, -inf }
 0x39e   : > { %304 = vmax.xlane.f32.xlu1 %v303_v26  ;;  %v298_v27 = vpop.f32.mrb[2].mxu1 }
 0x39f   : > { %v1012_v31 = vpop.f32.mrb[3].mxu1  ;;  %v306_v32 = vsel %vm302_vm10, %v298_v27, -inf }
 0x3a0   : > { %307 = vmax.xlane.f32.xlu0 %v306_v32  ;;  %v378_v32 = vsub.s32 0, %v1450_v28 }
 0x42b   : > { %v305_v33 = vpop.xlane.xlu1 %304 }
 0x42c   : > { %v309_v35 = vsub.f32 %v295_v23, %v305_v33  ;;  %v379_v33 = vrot.slane %v1432_v22, %v378_v32 }
 0x42d   : > { %v308_v36 = vpop.xlane.xlu0 %307 }
 0x42e   : > { %v311_v37 = vmul.f32 1.442695, %v309_v35  ;;  %v310_v38 = vsub.f32 %v298_v27, %v308_v36 }
 0x430   : > { %1161 = vpow2.f32 %v311_v37  ;;  %v313_v39 = vmul.f32 1.442695, %v310_v38 }
 0x432   : > { %1163 = vpow2.f32 %v313_v39 }
 0x43a   : > { %v1162_v46 = vpop.eup %1161 }
 0x43b   : > { %v315_v47 = vsel %vm302_vm10, %v1162_v46, 0.0 }
 0x43c   : > { %v1164_v48 = vpop.eup %1163  ;;  %316 = vadd.xlane.f32.xlu0 %v315_v47 }
 0x43d   : > { %v318_v49 = vsel %vm302_vm10, %v1164_v48, 0.0 }
 0x43e   : > { %319 = vadd.xlane.f32.xlu1 %v318_v49 }
 0x452   : > { %327 = vrot.lane.b32.xlu0 %v1462_v34, %s1272_s25 }
 0x4c9   : > { %v317_v50 = vpop.xlane.xlu0 %316 }
 0x4ca   : > { %1165 = vrcp.f32 %v317_v50 }
 0x4cb   : > { %v320_v51 = vpop.xlane.xlu1 %319 }
 0x4cc   : > { %1167 = vrcp.f32 %v320_v51 }
 0x4cd   : > { %v328_v52 = vpop.permute.xlu0 %327 }
 0x4ce   : > { %1014 = vmatpush3.bf16.msra.mxu1 %v328_v52 }
 0x4cf   : > { %1019 = vmatprep.subr.bf16.mxu1 %v1269_v45 }
 0x4d4   : > { %v1166_v53 = vpop.eup %1165 }
 0x4d5   : > { %v323_v55 = vmul.f32 %v1166_v53, %v1162_v46 }
 0x4d6   : > { %v1168_v54 = vpop.eup %1167 }
 0x4d7   : > { %v324_v56 = vmul.f32 %v1168_v54, %v1164_v48 }
 0x4d9   : > { %v325_v59 = vpack.c.bf16 %v324_v56, %v323_v55 }
 0x4db   : > { %1016 = vmatmul.mubr.msk.bf16.vlgmr.msra.gmra.mrb[4].mxu1 %vm302_vm10, %v325_v59 }
 0x4dc   : > { %1020 = vmatpush3.bf16.msra.mxu1 %v924_v57  ;;  %1023 = vmatprep.mubr.msk.bf16.mxu1 %vm1270_vm6, %v1269_v45  ;;  %vm501_vm6 = vcmp.lt.s32.totalorder %v1452_v29, %v1455_v30 }
 0x4dd   : > { %1021 = vmatprep.subr.bf16.mxu1 %v1269_v45 }
 0x4e0   : > { %1022 = vmatpush3.bf16.msra.mxu1 %v925_v61 }
 0x5ae   : > { %v367_v62 = vpop.f32.mrb[4].mxu1 }
 0x5af   : > { %v368_v63 = vadd.f32 %v367_v62, %v244_v58  ;;  %v1017_v23 = vpop.f32.mrb[5].mxu1  ;;  %v1273_v58 = vmov 1  }
 0x5b0   : > { %v370_v25 = vpop.f32.mrb[6].mxu1  ;;  %1159 = vset.pattern.permute.xlu1 %v1273_v58  ;;  %1160 = vset.pattern.permute.xlu0 %v1273_v58 }
 0x5b1   : > { %v371_v26 = vadd.f32 %v370_v25, %v247_v60  ;;  %v1018_v27 = vpop.f32.mrb[7].mxu1 }
 0x5b3   : > { %v374_v31 = vpack.c.bf16 %v371_v26, %v368_v63 }
 0x5b5   : > { %1024 = vmatmul.mubr.msk.bf16.vlgmr.msra.gmra.mrb[8].mxu1 %vm1723_vm3, %v374_v31 }
 0x688   : > { %v430_v35 = vpop.f32.mrb[8].mxu1 }
 0x689   : > { %v431_v36 = vadd.f32 %v430_v35, %v379_v33  ;;  %v1025_v37 = vpop.f32.mrb[9].mxu1 }
 0x68a   : > { %v433_v38 = vpop.f32.mrb[10].mxu1 }
 0x68b   : > { %437 = vmax.xlane.f32.xlu1 %v431_v36  ;;  %v1026_v39 = vpop.f32.mrb[11].mxu1  ;;  %v434_v46 = vadd.f32 %v433_v38, %v379_v33 }
 0x68f   : > { %439 = vmax.xlane.f32.xlu1 %v434_v46 }
 0x718   : > { %v438_v60 = vpop.xlane.xlu1 %437 }
 0x719   : > { %v473_v47 = vsel %vm1714_vm11, %v438_v60, -1e+30  ;;  %vm441_vm14 = vcmp.eq.f32.partialorder %v431_v36, %v438_v60 }
 0x71a   : > { %477 = vperm.xlu1 %1159, %v473_v47   ;;  %v443_v51 = vsel %vm441_vm14, %v1452_v29, 128 }
 0x71b   : > { %v446_v53 = vshra.s32 %v443_v51, 16  ;;  %v445_v36 = vand.u32 65535, %v443_v51  ;;  %v529_v51 = vsel %vm39_vm0, 1, %v1268_v44 }
 0x71c   : > { %v440_v48 = vpop.xlane.xlu1 %439 }
 0x71d   : > { %v474_v49 = vsel %vm150_vm12, %v440_v48, -1e+30  ;;  %vm442_vm13 = vcmp.eq.f32.partialorder %v434_v46, %v440_v48  ;;  %v448_v55 = vcvt.s32.f32 %v446_v53  ;;  %v447_v46 = vcvt.s32.f32 %v445_v36 }
 0x71e   : > { %482 = vperm.xlu0 %1160, %v474_v49   ;;  %v444_v50 = vsel %vm442_vm13, %v1452_v29, 128 }
 0x71f   : > { %v460_v52 = vshra.s32 %v444_v50, 16  ;;  %v459_v35 = vand.u32 65535, %v444_v50 }
 0x721   : > { %v462_v54 = vcvt.s32.f32 %v460_v52  ;;  %v461_v38 = vcvt.s32.f32 %v459_v35 }
 0x73d   : > { %463 = vmin.xlane.f32.xlu0 %v462_v54 }
 0x73e   : > { %449 = vmin.xlane.f32.xlu1 %v448_v55 }
 0x799   : > { %v478_v57 = vpop.permute.xlu1 %477 }
 0x79a   : > { %v485_v61 = vsel %vm1725_vm4, %v478_v57, 0.0 }
 0x79b   : > { %v487_v63 = vsel %vm302_vm10, %v485_v61, 0.0 }
 0x79d   : > { %v483_v56 = vpop.permute.xlu0 %482 }
 0x79e   : > { %v486_v59 = vsel %vm1724_vm5, %v483_v56, 0.0 }
 0x79f   : > { %v488_v62 = vsel %vm302_vm10, %v486_v59, 0.0 }
 0x7a0   : > { %v489_v23 = vadd.f32 %v488_v62, %v487_v63 }
 0x7a2   : > { %v490_v25 = vrot.slane %v489_v23, 4 }
 0x7a4   : > { %v491_v26 = vadd.f32 %v490_v25, %v489_v23 }
 0x7a6   : > { %v492_v27 = vrot.slane %v491_v26, 2 }
 0x7a8   : > { %v493_v31 = vadd.f32 %v492_v27, %v491_v26 }
 0x7aa   : > { %v494_v32 = vrot.slane %v493_v31, 1 }
 0x7ac   : > { %v495_v33 = vadd.f32 %v494_v32, %v493_v31 }
 0x7ae   : > { %vm499_vm15 = vcmp.eq.f32.partialorder %v495_v33, %v483_v56  ;;  %vm498_vm7 = vcmp.eq.f32.partialorder %v495_v33, %v478_v57  ;;  %vm497_vm9 = vcmp.gt.f32.partialorder %v495_v33, %v483_v56  ;;  %vm496_vm14 = vcmp.gt.f32.partialorder %v495_v33, %v478_v57 }
 0x7af   : > { %vm503_vm13 = vmand %vm499_vm15, %vm501_vm6  ;;  %v516_v56 = vstv %s36_s29 }
 0x7b0   : > { %vm502_vm4 = vmand %vm498_vm7, %vm500_vm8 }
 0x7b1   : > { %vm505_vm5 = vmor %vm497_vm9, %vm503_vm13 }
 0x7b2   : > { %vm504_vm2 = vmor %vm496_vm14, %vm502_vm4  ;;  %v928_v47 = vsel %vm505_vm5, 1.0, %v1269_v45  ;;  %vm1726_vm5 = vcmp.ne.s32.totalorder %v1235_v41, 0 }
 0x7b3   : > { %v927_v48 = vsel %vm504_vm2, 1.0, %v1269_v45  ;;  %v513_v49 = vsel %vm302_vm10, %v928_v47, 0.0  ;;  %v530_v45 = vsel %vm40_vm1, 1, %v1268_v44 }
 0x7b4   : > { %v510_v50 = vsel %vm302_vm10, %v927_v48, 0.0 }
 0x7ca   : > { %v464_v37 = vpop.xlane.xlu0 %463 }
 0x7cb   : > { %v450_v39 = vpop.xlane.xlu1 %449  ;;  %vm465_vm3 = vcmp.eq.f32.partialorder %v462_v54, %v464_v37  ;;  %v470_v53 = vcvt.f32.s32 %v464_v37 }
 0x7cc   : > { %v466_v58 = vsel %vm465_vm3, %v461_v38, inf  ;;  %vm451_vm11 = vcmp.eq.f32.partialorder %v448_v55, %v450_v39  ;;  %v456_v55 = vcvt.f32.s32 %v450_v39 }
 0x7cd   : > { %467 = vmin.xlane.f32.xlu1 %v466_v58  ;;  %v452_v60 = vsel %vm451_vm11, %v447_v46, inf  ;;  %v471_v61 = vshll.u32 %v470_v53, 16 }
 0x7ce   : > { %453 = vmin.xlane.f32.xlu0 %v452_v60  ;;  %v457_v63 = vshll.u32 %v456_v55, 16 }
 0x7d1   : > { %514 = vadd.xlane.f32.xlu1 %v513_v49 }
 0x7d2   : > { %511 = vadd.xlane.f32.xlu0 %v510_v50 }
 0x7e2   : > { %523 = vrot.lane.b32.xlu1 %v1239_v42, %s1274_s0 }
 0x7e6   : > { %531 = vrot.lane.b32.xlu1 %v529_v51, %s1275_s26 }
 0x7e8   : > { %521 = vrot.lane.b32.xlu0 %v1243_v43, %s1274_s0 }
 0x7ec   : > { %533 = vrot.lane.b32.xlu0 %v530_v45, %s1275_s26 }
 0x85a   : > { %v468_v52 = vpop.xlane.xlu1 %467 }
 0x85b   : > { %v454_v54 = vpop.xlane.xlu0 %453  ;;  %v469_v42 = vcvt.f32.s32 %v468_v52 }
 0x85c   : > { %v455_v57 = vcvt.f32.s32 %v454_v54 }
 0x85d   : > { %v472_v43 = vadd.s32 %v471_v61, %v469_v42 }
 0x85e   : > { %v515_v59 = vpop.xlane.xlu1 %514  ;;  %v458_v23 = vadd.s32 %v457_v63, %v455_v57 }
 0x85f   : > { %vm518_vm2 = vcmp.lt.f32.partialorder %v515_v59, %v516_v56  ;;  %v512_v62 = vpop.xlane.xlu0 %511 }
 0x860   : > { %vm517_vm3 = vcmp.lt.f32.partialorder %v512_v62, %v516_v56  ;;  %vm520_vm4 = vmand %vm150_vm12, %vm518_vm2 }
 0x861   : > { %vm519_vm10 = vmand %vm1726_vm5, %vm517_vm3 }
 0x862   : > { %v524_v25 = vpop.permute.xlu1 %523 }
 0x863   : > { %v522_v26 = vpop.permute.xlu0 %521  ;;  %v526_v27 = vsel %vm520_vm4, %v472_v43, %v524_v25 }
 0x864   : > { %543 = vrot.lane.b32.xlu0 %v526_v27, %s1275_s26  ;;  %v525_v31 = vsel %vm519_vm10, %v458_v23, %v522_v26  ;;  %vm528_vm7 = vcmp.eq.s32.totalorder %v526_v27, 49 }
 0x865   : > { %541 = vrot.lane.b32.xlu1 %v525_v31, %s1275_s26  ;;  %vm527_vm11 = vcmp.eq.s32.totalorder %v525_v31, 49 }
 0x866   : > { %v532_v32 = vpop.permute.xlu1 %531 }
 0x867   : > { %vm535_vm15 = vcmp.ne.s32.totalorder %v532_v32, 0  ;;  %v534_v33 = vpop.permute.xlu0 %533 }
 0x868   : > { %vm537_vm6 = vmand %vm527_vm11, %vm535_vm15  ;;  %vm536_vm8 = vcmp.ne.s32.totalorder %v534_v33, 0 }
 0x869   : > { %v539_v35 = vsel %vm537_vm6, 1, %v1268_v44   ;;  %vm538_vm9 = vmand %vm528_vm7, %vm536_vm8 }
 0x86a   : > { %v540_v36 = vsel %vm538_vm9, 1, %v1268_v44   ;;  %v1728_v41 = vmov %v539_v35  ;;  %v1731_v37 = vmov (%p141_p6), %v539_v35 }
 0x86b   : > { %v1727_v40 = vmov %v540_v36 }
 0x8d2   :  { %144 = sbr.rel (!%p141_p6) target bundleno = 246 (0xf6), region = 51 }
 0x8d6   : > { %v544_v38 = vpop.permute.xlu0 %543  }
 0x8d7   : > { %v542_v39 = vpop.permute.xlu1 %541   ;;  %v1729_v42 = vmov %v544_v38 }
 0x8d8   : > { %v1730_v43 = vmov %v542_v39 }
 0x8d9 PF:  { %1027 = vmatprep.subr.bf16.mxu0 %v1266_v24  ;;  %v929_v0 = vcombine.low %v1331_v2, %v1336_v3  ;;  %vm1732_vm0 = vmmov 0   ;;  %v1276_v1 = vmov 0   ;;  %v930_v30 = vcombine.low %v1341_v4, %v1346_v5  ;;  %1047 = vmatprep.subr.bf16.mxu1 %v1266_v24  ;;  %s1278_s23 = smov 96   ;;  %s1279_s27 = smov 1   ;;  %v1263_v39 = vphi %v1718_v39, %v542_v39   ;;  %v1259_v38 = vphi %v1717_v38, %v544_v38   ;;  %v1255_v37 = vphi %v1716_v37, %v1731_v37   ;;  %v1251_v36 = vphi %v1715_v36, %v540_v36  }
 0x8da   :  { %1043 = vmatprep.mubr.msk.bf16.mxu0 %vm1732_vm0, %v1266_v24  ;;  %1169 = vset.pattern.permute.xlu0 %v1276_v1  ;;  %v931_v2 = vcombine.low %v1351_v6, %v1356_v7  ;;  %v932_v3 = vcombine.low %v1361_v8, %v1366_v9  ;;  %v933_v4 = vcombine.low %v1371_v10, %v1376_v11  ;;  %v1277_v10 = vmov 1.0|1.0  }
 0x8db   :  { %546 = vperm.xlu0 %1169, %v1263_v39   ;;  %1028 = vmatpush3.bf16.msra.mxu0 %v929_v0  ;;  %v934_v5 = vcombine.low %v1381_v12, %v1386_v13  ;;  %v935_v6 = vcombine.low %v1391_v14, %v1396_v15  ;;  %v936_v7 = vcombine.low %v1402_v16, %v1407_v17  ;;  %vm1733_vm14 = vcmask 261120  }
 0x8dc   :  { %1029 = vmatprep.subr.bf16.mxu0 %v1266_v24  ;;  %1049 = vmatprep.mubr.msk.bf16.mxu1 %vm1732_vm0, %v1266_v24  ;;  %v653_v11 = vsel %vm1733_vm14, %v1462_v34, 0  ;;  %vm1734_vm2 = vmmov %vm1733_vm14  ;;  %vm696_vm3 = vcmask 130048   ;;  %v941_v43 = vcombine.low %v1412_v18, %v1417_v19  ;;  %v772_v19 = vsub.s32 0, %v1450_v28 }
 0x8dd   :  { %1048 = vmatpush3.bf16.xpose.msra.mxu1 %v653_v11  ;;  %vm1735_vm4 = vmmov %vm1734_vm2  ;;  %vm867_vm6 = vcmp.ne.s32.totalorder %v1255_v37, 0  ;;  %vm868_vm7 = vcmp.ne.s32.totalorder %v1251_v36, 0 }
 0x8de   :  { %1053 = vmatprep.subr.bf16.mxu1 %v1266_v24  ;;  %v773_v35 = vrot.slane %v1432_v22, %v772_v19 }
 0x8df   :  { %549 = vperm.xlu0 %1169, %v1259_v38   ;;  %1030 = vmatpush3.bf16.msra.mxu0 %v930_v30 }
 0x8e0   :  { %1031 = vmatprep.subr.bf16.mxu0 %v1266_v24 }
 0x8e3   :  { %1032 = vmatpush3.bf16.msra.mxu0 %v931_v2 }
 0x8e4   :  { %1033 = vmatprep.subr.bf16.mxu0 %v1266_v24 }
 0x8e7   :  { %1034 = vmatpush3.bf16.msra.mxu0 %v932_v3 }
 0x8e8   :  { %1035 = vmatprep.subr.bf16.mxu0 %v1266_v24 }
 0x8eb   :  { %1036 = vmatpush3.bf16.msra.mxu0 %v933_v4 }
 0x8ec   :  { %1037 = vmatprep.subr.bf16.mxu0 %v1266_v24 }
 0x8ef   :  { %1038 = vmatpush3.bf16.msra.mxu0 %v934_v5 }
 0x8f0   :  { %1039 = vmatprep.subr.bf16.mxu0 %v1266_v24 }
 0x8f3   :  { %1040 = vmatpush3.bf16.msra.mxu0 %v935_v6 }
 0x8f4   :  { %1041 = vmatprep.subr.bf16.mxu0 %v1266_v24 }
 0x8f7   :  { %1042 = vmatpush3.bf16.msra.mxu0 %v936_v7 }
 0x95a   :  { %v547_v8 = vpop.permute.xlu0 %546 }
 0x95b   :  { %vm551_vm1 = vcmp.eq.s32.totalorder %v1452_v29, %v547_v8 }
 0x95e   :  { %v550_v9 = vpop.permute.xlu0 %549 }
 0x95f   :  { %vm552_vm12 = vcmp.eq.s32.totalorder %v1452_v29, %v550_v9 }
 0x960   :  { %vm937_vm13 = vmpackc.low %vm552_vm12, %vm551_vm1 }
 0x961   :  { %1044 = vmatmul.mubr.msk.bf16.vlgmr.msra.gmra.mrb[0].mxu0 %vm937_vm13, %v1277_v10 }
 0xa34   :  { %v638_v12 = vpop.f32.mrb[0].mxu0 }
 0xa35   :  { %v1045_v13 = vpop.f32.mrb[1].mxu0 }
 0xa36   :  { %v641_v14 = vpop.f32.mrb[2].mxu0 }
 0xa37   :  { %v1046_v15 = vpop.f32.mrb[3].mxu0  ;;  %v645_v16 = vpack.c.bf16 %v641_v14, %v638_v12 }
 0xa39   :  { %647 = vrot.lane.b32.xlu1 %v645_v16, %s1278_s23 }
 0xaab   :  { %v648_v17 = vpop.permute.xlu1 %647 }
 0xaac   :  { %1050 = vmatmul.mubr.msk.bf16.vlgmr.msra.gmra.mrb[0].mxu1 %vm1734_vm2, %v648_v17 }
 0xaad   :  { %1055 = vmatprep.mubr.msk.bf16.mxu1 %vm1732_vm0, %v1266_v24 }
 0xb7f   :  { %v689_v40 = vpop.f32.mrb[0].mxu1 }
 0xb80   :  { %v1051_v41 = vpop.f32.mrb[1].mxu1  ;;  %v697_v44 = vsel %vm696_vm3, %v689_v40, -inf }
 0xb81   :  { %698 = vmax.xlane.f32.xlu1 %v697_v44  ;;  %v692_v46 = vpop.f32.mrb[2].mxu1 }
 0xb82   :  { %v1052_v58 = vpop.f32.mrb[3].mxu1  ;;  %v700_v60 = vsel %vm696_vm3, %v692_v46, -inf }
 0xb83   :  { %701 = vmax.xlane.f32.xlu0 %v700_v60 }
 0xc0e   :  { %v699_v47 = vpop.xlane.xlu1 %698 }
 0xc0f   :  { %v703_v48 = vsub.f32 %v689_v40, %v699_v47 }
 0xc10   :  { %v702_v49 = vpop.xlane.xlu0 %701 }
 0xc11   :  { %v705_v50 = vmul.f32 1.442695, %v703_v48  ;;  %v704_v51 = vsub.f32 %v692_v46, %v702_v49 }
 0xc13   :  { %1171 = vpow2.f32 %v705_v50  ;;  %v707_v45 = vmul.f32 1.442695, %v704_v51 }
 0xc15   :  { %1173 = vpow2.f32 %v707_v45 }
 0xc1d   :  { %v1172_v52 = vpop.eup %1171 }
 0xc1e   :  { %v709_v53 = vsel %vm696_vm3, %v1172_v52, 0.0 }
 0xc1f   :  { %v1174_v54 = vpop.eup %1173  ;;  %710 = vadd.xlane.f32.xlu0 %v709_v53 }
 0xc20   :  { %v712_v55 = vsel %vm696_vm3, %v1174_v54, 0.0 }
 0xc21   :  { %713 = vadd.xlane.f32.xlu1 %v712_v55 }
 0xc35   :  { %721 = vrot.lane.b32.xlu0 %v1462_v34, %s1278_s23  ;;  %v942_v34 = vcombine.low %v1422_v20, %v1427_v21 }
 0xc39   :  { %869 = vrot.lane.b32.xlu0 %v1263_v39, %s1279_s27 }
 0xcac   :  { %v711_v56 = vpop.xlane.xlu0 %710 }
 0xcad   :  { %1175 = vrcp.f32 %v711_v56 }
 0xcae   :  { %v714_v42 = vpop.xlane.xlu1 %713 }
 0xcaf   :  { %1177 = vrcp.f32 %v714_v42 }
 0xcb0   :  { %v722_v57 = vpop.permute.xlu0 %721 }
 0xcb1   :  { %1054 = vmatpush3.bf16.msra.mxu1 %v722_v57 }
 0xcb2   :  { %1059 = vmatprep.subr.bf16.mxu1 %v1266_v24 }
 0xcb4   :  { %v870_v44 = vpop.permute.xlu0 %869 }
 0xcb7   :  { %v1176_v59 = vpop.eup %1175 }
 0xcb8   :  { %v717_v62 = vmul.f32 %v1176_v59, %v1172_v52 }
 0xcb9   :  { %v1178_v61 = vpop.eup %1177 }
 0xcba   :  { %v718_v63 = vmul.f32 %v1178_v61, %v1174_v54 }
 0xcbc   :  { %v719_v23 = vpack.c.bf16 %v718_v63, %v717_v62 }
 0xcbe   :  { %1056 = vmatmul.mubr.msk.bf16.vlgmr.msra.gmra.mrb[4].mxu1 %vm696_vm3, %v719_v23 }
 0xcbf   :  { %1060 = vmatpush3.bf16.msra.mxu1 %v941_v43  ;;  %1063 = vmatprep.mubr.msk.bf16.mxu1 %vm1732_vm0, %v1266_v24 }
 0xcc0   :  { %1061 = vmatprep.subr.bf16.mxu1 %v1266_v24 }
 0xcc3   :  { %1062 = vmatpush3.bf16.msra.mxu1 %v942_v34 }
 0xd91   :  { %v761_v25 = vpop.f32.mrb[4].mxu1 }
 0xd92   :  { %v762_v26 = vadd.f32 %v761_v25, %v638_v12  ;;  %v1057_v27 = vpop.f32.mrb[5].mxu1 }
 0xd93   :  { %v764_v31 = vpop.f32.mrb[6].mxu1 }
 0xd94   :  { %v765_v32 = vadd.f32 %v764_v31, %v641_v14  ;;  %v1058_v33 = vpop.f32.mrb[7].mxu1 }
 0xd96   :  { %v768_v18 = vpack.c.bf16 %v765_v32, %v762_v26 }
 0xd98   :  { %1064 = vmatmul.mubr.msk.bf16.vlgmr.msra.gmra.mrb[8].mxu1 %vm1735_vm4, %v768_v18 }
 0xe6b   :  { %v824_v0 = vpop.f32.mrb[8].mxu1 }
 0xe6c   :  { %v825_v1 = vadd.f32 %v824_v0, %v773_v35  ;;  %v1065_v24 = vpop.f32.mrb[9].mxu1 }
 0xe6d   :  { %v827_v30 = vpop.f32.mrb[10].mxu1 }
 0xe6e   :  { %831 = vmax.xlane.f32.xlu1 %v825_v1  ;;  %v1066_v20 = vpop.f32.mrb[11].mxu1  ;;  %v828_v21 = vadd.f32 %v827_v30, %v773_v35 }
 0xe72   :  { %833 = vmax.xlane.f32.xlu1 %v828_v21 }
 0xefb   :  { %v832_v2 = vpop.xlane.xlu1 %831 }
 0xefc   :  { %vm835_vm5 = vcmp.eq.f32.partialorder %v825_v1, %v832_v2 }
 0xefd   :  { %v837_v3 = vsel %vm835_vm5, %v1452_v29, 128 }
 0xefe   :  { %v840_v4 = vshra.s32 %v837_v3, 16  ;;  %v839_v8 = vand.u32 65535, %v837_v3 }
 0xeff   :  { %v834_v5 = vpop.xlane.xlu1 %833 }
 0xf00   :  { %vm836_vm10 = vcmp.eq.f32.partialorder %v828_v21, %v834_v5  ;;  %v842_v6 = vcvt.s32.f32 %v840_v4  ;;  %v841_v9 = vcvt.s32.f32 %v839_v8 }
 0xf01   :  { %v838_v28 = vsel %vm836_vm10, %v1452_v29, 128  ;;  %v1280_v29 = vmov 1  }
 0xf02   :  { %v854_v7 = vshra.s32 %v838_v28, 16  ;;  %843 = vmin.xlane.f32.xlu1 %v842_v6  ;;  %v853_v10 = vand.u32 65535, %v838_v28  ;;  %1170 = vset.pattern.permute.xlu0 %v1280_v29 }
 0xf04   :  { %v856_v22 = vcvt.s32.f32 %v854_v7  ;;  %v855_v13 = vcvt.s32.f32 %v853_v10 }
 0xf06   :  { %857 = vmin.xlane.f32.xlu1 %v856_v22 }
 0xf8f   :  { %v844_v11 = vpop.xlane.xlu1 %843 }
 0xf90   :  { %vm845_vm11 = vcmp.eq.f32.partialorder %v842_v6, %v844_v11  ;;  %v850_v16 = vcvt.f32.s32 %v844_v11 }
 0xf91   :  { %v846_v12 = vsel %vm845_vm11, %v841_v9, inf }
 0xf92   :  { %847 = vmin.xlane.f32.xlu1 %v846_v12  ;;  %v851_v40 = vshll.u32 %v850_v16, 16 }
 0xf93   :  { %v858_v14 = vpop.xlane.xlu1 %857 }
 0xf94   :  { %vm859_vm15 = vcmp.eq.f32.partialorder %v856_v22, %v858_v14  ;;  %v864_v39 = vcvt.f32.s32 %v858_v14 }
 0xf95   :  { %v860_v15 = vsel %vm859_vm15, %v855_v13, inf }
 0xf96   :  { %861 = vmin.xlane.f32.xlu1 %v860_v15  ;;  %v865_v60 = vshll.u32 %v864_v39, 16 }
 0xfa7   :  { %871 = vrot.lane.b32.xlu1 %v1259_v38, %s1279_s27 }
0x101f   :  { %v848_v17 = vpop.xlane.xlu1 %847 }
0x1020   :  { %v849_v41 = vcvt.f32.s32 %v848_v17 }
0x1022   :  { %v852_v46 = vadd.s32 %v851_v40, %v849_v41 }
0x1023   :  { %v862_v58 = vpop.xlane.xlu1 %861 }
0x1024   :  { %v863_v47 = vcvt.f32.s32 %v862_v58  ;;  %v873_v48 = vsel %vm867_vm6, %v852_v46, %v870_v44 }
0x1025   :  { %876 = vperm.xlu0 %1170, %v873_v48  }
0x1026   :  { %v866_v49 = vadd.s32 %v865_v60, %v863_v47 }
0x1027   :  { %v872_v50 = vpop.permute.xlu1 %871 }
0x1028   :  { %v874_v51 = vsel %vm868_vm7, %v866_v49, %v872_v50 }
0x1029   :  { %879 = vperm.xlu0 %1170, %v874_v51  }
0x10a4   :  { %v877_v38 = vpop.permute.xlu0 %876 }
0x10a5   :  { %881 = vst [vmem:[%s1710_s5] sm:$0xff] %v877_v38 }
0x10a8   :  { %v880_v45 = vpop.permute.xlu0 %879 }
0x10a9   :  { %882 = vst [vmem:[%s1710_s5 + $0x8] sm:$0xff] %v880_v45 }
0x10aa   :  { %887 = vsyncpa [#allocation3], 1 }

</bundles_post_ra>
